<compile_context>
chip_gen: v7x
topology: tpu7x:2x2x1
jax: 0.10.0
libtpu: 0.0.40
codegen_flags: <defaults>
</compile_context>

<pallas_src>
import math

import jax
import jax.numpy as jnp
from jax.experimental import pallas as pl
from jax.experimental.pallas import tpu as pltpu

# ---------------- model dims (small synthetic config) ----------------
B = 2        # batch
S = 8        # sequence length
D = 32       # d_model
F = 64       # d_ff
H = 4        # nhead
DK = D // H  # head dim
HB = H * B   # flattened (head, batch) axis used for the score contractions (n = h*B + b)
BS = B * S   # flattened (batch, seq) axis used for all projections
EPS = 1e-6


def _layer_norm(v, a, b):
    # PyTorch module: mean over last dim; torch.std(-1) is UNBIASED (ddof=1); y = a*(x-m)/(std+eps)+b
    m = jnp.mean(v, axis=-1, keepdims=True)
    diff = v - m
    var = jnp.sum(diff * diff, axis=-1, keepdims=True) / (D - 1)
    return a * diff / (jnp.sqrt(var) + EPS) + b


def encoder_layer_kernel(
    x_ref, mask_ref,
    n1a_ref, n1b_ref,
    wqkv_ref, bqkv_ref,
    wo_ref, bo_ref,
    n2a_ref, n2b_ref,
    w1_ref, b1_ref, w2_ref, b2_ref,
    o_ref,
):
    x = x_ref[...]                # (BS, D)
    mask = mask_ref[...]          # (HB, S, S), already tiled over heads (n = h*B + b)

    # ---- sublayer 1: pre-norm -> multi-head self-attention -> residual
    x2 = _layer_norm(x, n1a_ref[...], n1b_ref[...])

    # Fused Q/K/V projection: one lane-dense (BS, D) @ (D, 3D) matmul.
    qkv = jnp.dot(x2, wqkv_ref[...], preferred_element_type=jnp.float32) + bqkv_ref[...]

    def split_heads(base):
        # Static lane slices of width DK, restructured to (HB, S, DK) with n = h*B + b.
        return jnp.concatenate(
            [qkv[:, base + h * DK: base + (h + 1) * DK].reshape(B, S, DK)
             for h in range(H)],
            axis=0)

    q = split_heads(0)            # (HB, S, DK)
    k = split_heads(D)
    v = split_heads(2 * D)

    scale = 1.0 / math.sqrt(DK)
    scores = jnp.einsum('nqd,nkd->nqk', q, k,
                        preferred_element_type=jnp.float32) * scale      # (HB, S, S)
    scores = jnp.where(mask == 0.0, -1e9, scores)                        # single masked_fill

    # softmax over keys; normalization via approximate reciprocal (EUP slot)
    smax = jnp.max(scores, axis=-1, keepdims=True)
    e = jnp.exp(scores - smax)
    p = e * pl.reciprocal(jnp.sum(e, axis=-1, keepdims=True), approx=True)

    ctx = jnp.einsum('nqk,nkd->nqd', p, v,
                     preferred_element_type=jnp.float32)                 # (HB, S, DK)

    # Reassemble heads onto the lane dim (PyTorch head-concat order), then one output matmul.
    ctx_cat = jnp.concatenate([ctx[h * B:(h + 1) * B] for h in range(H)],
                              axis=-1)                                    # (B, S, D)
    attn = jnp.dot(ctx_cat.reshape(BS, D), wo_ref[...],
                   preferred_element_type=jnp.float32) + bo_ref[...]      # (BS, D)

    x = x + attn

    # ---- sublayer 2: pre-norm -> feed-forward -> residual
    x2 = _layer_norm(x, n2a_ref[...], n2b_ref[...])
    h1 = jnp.dot(x2, w1_ref[...], preferred_element_type=jnp.float32) + b1_ref[...]
    h1 = jnp.maximum(h1, 0.0)
    ff = jnp.dot(h1, w2_ref[...], preferred_element_type=jnp.float32) + b2_ref[...]

    o_ref[...] = (x + ff).astype(o_ref.dtype)


def encoder_layer(x, mask, params):
    """x: (B, S, D) f32, mask: (B, S, S) f32. Returns (B, S, D) f32.

    params hold weights in (in, out) layout (already transposed vs. PyTorch) and 1-D biases.
    Weight fusion / mask tiling below is wrapper-side plumbing (free JAX ops outside the kernel).
    """
    (n1a, n1b, wq, bq, wk, bk, wv, bv, wo, bo, n2a, n2b, w1, b1, w2, b2) = params

    wqkv = jnp.concatenate([wq, wk, wv], axis=1)                # (D, 3D)
    bqkv = jnp.concatenate([bq, bk, bv]).reshape(1, 3 * D)      # (1, 3D)
    mask_hb = jnp.concatenate([mask] * H, axis=0)               # (HB, S, S), n = h*B + b

    args = (
        x.reshape(BS, D), mask_hb,
        n1a.reshape(1, D), n1b.reshape(1, D),
        wqkv, bqkv,
        wo, bo.reshape(1, D),
        n2a.reshape(1, D), n2b.reshape(1, D),
        w1, b1.reshape(1, F),
        w2, b2.reshape(1, D),
    )

    flops = (2 * BS * D * (3 * D)        # fused q/k/v projection
             + 2 * 2 * HB * S * S * DK   # scores + p@v
             + 2 * BS * D * D            # output projection
             + 2 * 2 * BS * D * F)       # feed-forward
    bytes_accessed = int(sum(a.size * a.dtype.itemsize for a in args) + BS * D * 4)
    cost = pl.CostEstimate(flops=int(flops), transcendentals=int(HB * S * S),
                           bytes_accessed=bytes_accessed)

    out = pl.pallas_call(
        encoder_layer_kernel,
        out_shape=jax.ShapeDtypeStruct((BS, D), x.dtype),
        in_specs=[pl.BlockSpec(memory_space=pltpu.MemorySpace.VMEM) for _ in args],
        out_specs=pl.BlockSpec(memory_space=pltpu.MemorySpace.VMEM),
        cost_estimate=cost,
    )(*args)
    return out.reshape(B, S, D)


# ---------------- pure-JAX reference (for correctness check) ----------------
def encoder_layer_ref(x, mask, params):
    (n1a, n1b, wq, bq, wk, bk, wv, bv, wo, bo, n2a, n2b, w1, b1, w2, b2) = params

    def ln(v, a, b):
        m = jnp.mean(v, axis=-1, keepdims=True)
        diff = v - m
        var = jnp.sum(diff * diff, axis=-1, keepdims=True) / (D - 1)
        return a * diff / (jnp.sqrt(var) + EPS) + b

    x2 = ln(x, n1a, n1b)
    q = x2 @ wq + bq
    k = x2 @ wk + bk
    v = x2 @ wv + bv

    def split(t):
        return t.reshape(B, S, H, DK).transpose(0, 2, 1, 3)

    qh, kh, vh = split(q), split(k), split(v)
    scores = jnp.einsum("bhqd,bhkd->bhqk", qh, kh) / math.sqrt(DK)
    scores = jnp.where(mask[:, None, :, :] == 0, -1e9, scores)
    p = jax.nn.softmax(scores, axis=-1)
    o = jnp.einsum("bhqk,bhkd->bhqd", p, vh).transpose(0, 2, 1, 3).reshape(B, S, D)
    x = x + (o @ wo + bo)
    x2 = ln(x, n2a, n2b)
    ff = jnp.maximum(x2 @ w1 + b1, 0.0) @ w2 + b2
    return x + ff


if __name__ == "__main__":
    keys = jax.random.split(jax.random.PRNGKey(0), 12)

    # Deterministic synthetic parameters. Linear weights stored as (in, out),
    # i.e. already transposed relative to PyTorch's (out, in), so math is x @ W + b.
    n1a = jnp.ones((D,), jnp.float32)
    n1b = jnp.zeros((D,), jnp.float32)
    n2a = jnp.ones((D,), jnp.float32)
    n2b = jnp.zeros((D,), jnp.float32)

    wq = jax.random.normal(keys[0], (D, D), jnp.float32) * 0.1
    wk = jax.random.normal(keys[1], (D, D), jnp.float32) * 0.1
    wv = jax.random.normal(keys[2], (D, D), jnp.float32) * 0.1
    wo = jax.random.normal(keys[3], (D, D), jnp.float32) * 0.1
    bq = jax.random.normal(keys[4], (D,), jnp.float32) * 0.01
    bk = jax.random.normal(keys[5], (D,), jnp.float32) * 0.01
    bv = jax.random.normal(keys[6], (D,), jnp.float32) * 0.01
    bo = jax.random.normal(keys[7], (D,), jnp.float32) * 0.01

    w1 = jax.random.normal(keys[8], (D, F), jnp.float32) * 0.1
    b1 = jax.random.normal(keys[9], (F,), jnp.float32) * 0.01
    w2 = jax.random.normal(keys[10], (F, D), jnp.float32) * 0.1
    b2 = jnp.zeros((D,), jnp.float32)

    params = (n1a, n1b, wq, bq, wk, bk, wv, bv, wo, bo, n2a, n2b, w1, b1, w2, b2)

    x = jax.random.normal(jax.random.PRNGKey(42), (B, S, D), jnp.float32)
    # Padding-style mask: batch 0 attends everywhere; batch 1 cannot attend to the last 2 keys.
    mask = jnp.ones((B, S, S), jnp.float32).at[1, :, S - 2:].set(0.0)

    out = jax.block_until_ready(encoder_layer(x, mask, params))
    ref = encoder_layer_ref(x, mask, params)

    assert out.shape == (B, S, D)
    err = float(jnp.max(jnp.abs(out - ref)))
    # approx-reciprocal softmax loosens numerics slightly vs. the exact-divide reference
    assert err < 2e-3, f"mismatch vs reference: max abs err = {err}"

    print("KERNEL_OK")
</pallas_src>

<mosaic_0001>
module attributes {stable_mosaic.version = 11 : i64} {
  func.func @encoder_layer_kernel(%arg0: memref<16x32xf32, #tpu.memory_space<vmem>>, %arg1: memref<8x8x8xf32, #tpu.memory_space<vmem>>, %arg2: memref<1x32xf32, #tpu.memory_space<vmem>>, %arg3: memref<1x32xf32, #tpu.memory_space<vmem>>, %arg4: memref<32x96xf32, #tpu.memory_space<vmem>>, %arg5: memref<1x96xf32, #tpu.memory_space<vmem>>, %arg6: memref<32x32xf32, #tpu.memory_space<vmem>>, %arg7: memref<1x32xf32, #tpu.memory_space<vmem>>, %arg8: memref<1x32xf32, #tpu.memory_space<vmem>>, %arg9: memref<1x32xf32, #tpu.memory_space<vmem>>, %arg10: memref<32x64xf32, #tpu.memory_space<vmem>>, %arg11: memref<1x64xf32, #tpu.memory_space<vmem>>, %arg12: memref<64x32xf32, #tpu.memory_space<vmem>>, %arg13: memref<1x32xf32, #tpu.memory_space<vmem>>, %arg14: memref<16x32xf32, #tpu.memory_space<vmem>>) attributes {dimension_semantics = [], scalar_prefetch = 0 : i64, scratch_operands = 0 : i64, tpu.core_type = #tpu.core_type<tc>} {
    %c0 = arith.constant 0 : index
    %c0_0 = arith.constant 0 : index
    %0 = vector.load %arg0[%c0, %c0_0] : memref<16x32xf32, #tpu.memory_space<vmem>>, vector<16x32xf32>
    %c0_1 = arith.constant 0 : index
    %c0_2 = arith.constant 0 : index
    %c0_3 = arith.constant 0 : index
    %1 = vector.load %arg1[%c0_1, %c0_2, %c0_3] : memref<8x8x8xf32, #tpu.memory_space<vmem>>, vector<8x8x8xf32>
    %c0_4 = arith.constant 0 : index
    %c0_5 = arith.constant 0 : index
    %2 = vector.load %arg2[%c0_4, %c0_5] : memref<1x32xf32, #tpu.memory_space<vmem>>, vector<1x32xf32>
    %c0_6 = arith.constant 0 : index
    %c0_7 = arith.constant 0 : index
    %3 = vector.load %arg3[%c0_6, %c0_7] : memref<1x32xf32, #tpu.memory_space<vmem>>, vector<1x32xf32>
    %cst = arith.constant dense<0.000000e+00> : vector<16xf32>
    %4 = vector.multi_reduction <add>, %0, %cst [1] : vector<16x32xf32> to vector<16xf32>
    %5 = vector.shape_cast %4 : vector<16xf32> to vector<16x1xf32>
    %cst_8 = arith.constant 3.200000e+01 : f32
    %6 = vector.broadcast %cst_8 : f32 to vector<16x1xf32>
    %7 = arith.divf %5, %6 : vector<16x1xf32>
    %8 = vector.broadcast %7 : vector<16x1xf32> to vector<16x32xf32>
    %9 = arith.subf %0, %8 : vector<16x32xf32>
    %10 = arith.mulf %9, %9 : vector<16x32xf32>
    %cst_9 = arith.constant dense<0.000000e+00> : vector<16xf32>
    %11 = vector.multi_reduction <add>, %10, %cst_9 [1] : vector<16x32xf32> to vector<16xf32>
    %12 = vector.shape_cast %11 : vector<16xf32> to vector<16x1xf32>
    %cst_10 = arith.constant 3.100000e+01 : f32
    %13 = vector.broadcast %cst_10 : f32 to vector<16x1xf32>
    %14 = arith.divf %12, %13 : vector<16x1xf32>
    %15 = vector.broadcast %2 : vector<1x32xf32> to vector<16x32xf32>
    %16 = arith.mulf %15, %9 : vector<16x32xf32>
    %17 = math.sqrt %14 : vector<16x1xf32>
    %cst_11 = arith.constant 9.99999997E-7 : f32
    %18 = vector.broadcast %cst_11 : f32 to vector<16x1xf32>
    %19 = arith.addf %17, %18 : vector<16x1xf32>
    %20 = vector.broadcast %19 : vector<16x1xf32> to vector<16x32xf32>
    %21 = arith.divf %16, %20 : vector<16x32xf32>
    %22 = vector.broadcast %3 : vector<1x32xf32> to vector<16x32xf32>
    %23 = arith.addf %21, %22 : vector<16x32xf32>
    %c0_12 = arith.constant 0 : index
    %c0_13 = arith.constant 0 : index
    %24 = vector.load %arg4[%c0_12, %c0_13] : memref<32x96xf32, #tpu.memory_space<vmem>>, vector<32x96xf32>
    %cst_14 = arith.constant dense<0.000000e+00> : vector<16x96xf32>
    %25 = tpu.matmul %23, %24, %cst_14 {dimension_numbers = #tpu.dot_dimension_numbers<[1], [0], [0], [1], [0, 0, 1, 1], [], []>} : vector<16x32xf32>, vector<32x96xf32>, vector<16x96xf32> -> vector<16x96xf32>
    %c0_15 = arith.constant 0 : index
    %c0_16 = arith.constant 0 : index
    %26 = vector.load %arg5[%c0_15, %c0_16] : memref<1x96xf32, #tpu.memory_space<vmem>>, vector<1x96xf32>
    %27 = vector.broadcast %26 : vector<1x96xf32> to vector<16x96xf32>
    %28 = arith.addf %25, %27 : vector<16x96xf32>
    %29 = vector.extract_strided_slice %28 {offsets = [0, 0], sizes = [16, 8], strides = [1, 1]} : vector<16x96xf32> to vector<16x8xf32>
    %30 = vector.shape_cast %29 : vector<16x8xf32> to vector<2x8x8xf32>
    %31 = vector.extract_strided_slice %28 {offsets = [0, 8], sizes = [16, 8], strides = [1, 1]} : vector<16x96xf32> to vector<16x8xf32>
    %32 = vector.shape_cast %31 : vector<16x8xf32> to vector<2x8x8xf32>
    %33 = vector.extract_strided_slice %28 {offsets = [0, 16], sizes = [16, 8], strides = [1, 1]} : vector<16x96xf32> to vector<16x8xf32>
    %34 = vector.shape_cast %33 : vector<16x8xf32> to vector<2x8x8xf32>
    %35 = vector.extract_strided_slice %28 {offsets = [0, 24], sizes = [16, 8], strides = [1, 1]} : vector<16x96xf32> to vector<16x8xf32>
    %36 = vector.shape_cast %35 : vector<16x8xf32> to vector<2x8x8xf32>
    %37 = tpu.concatenate %30, %32, %34, %36 in 0 : vector<2x8x8xf32>, vector<2x8x8xf32>, vector<2x8x8xf32>, vector<2x8x8xf32> -> vector<8x8x8xf32>
    %38 = vector.extract_strided_slice %28 {offsets = [0, 32], sizes = [16, 8], strides = [1, 1]} : vector<16x96xf32> to vector<16x8xf32>
    %39 = vector.shape_cast %38 : vector<16x8xf32> to vector<2x8x8xf32>
    %40 = vector.extract_strided_slice %28 {offsets = [0, 40], sizes = [16, 8], strides = [1, 1]} : vector<16x96xf32> to vector<16x8xf32>
    %41 = vector.shape_cast %40 : vector<16x8xf32> to vector<2x8x8xf32>
    %42 = vector.extract_strided_slice %28 {offsets = [0, 48], sizes = [16, 8], strides = [1, 1]} : vector<16x96xf32> to vector<16x8xf32>
    %43 = vector.shape_cast %42 : vector<16x8xf32> to vector<2x8x8xf32>
    %44 = vector.extract_strided_slice %28 {offsets = [0, 56], sizes = [16, 8], strides = [1, 1]} : vector<16x96xf32> to vector<16x8xf32>
    %45 = vector.shape_cast %44 : vector<16x8xf32> to vector<2x8x8xf32>
    %46 = tpu.concatenate %39, %41, %43, %45 in 0 : vector<2x8x8xf32>, vector<2x8x8xf32>, vector<2x8x8xf32>, vector<2x8x8xf32> -> vector<8x8x8xf32>
    %47 = vector.extract_strided_slice %28 {offsets = [0, 64], sizes = [16, 8], strides = [1, 1]} : vector<16x96xf32> to vector<16x8xf32>
    %48 = vector.shape_cast %47 : vector<16x8xf32> to vector<2x8x8xf32>
    %49 = vector.extract_strided_slice %28 {offsets = [0, 72], sizes = [16, 8], strides = [1, 1]} : vector<16x96xf32> to vector<16x8xf32>
    %50 = vector.shape_cast %49 : vector<16x8xf32> to vector<2x8x8xf32>
    %51 = vector.extract_strided_slice %28 {offsets = [0, 80], sizes = [16, 8], strides = [1, 1]} : vector<16x96xf32> to vector<16x8xf32>
    %52 = vector.shape_cast %51 : vector<16x8xf32> to vector<2x8x8xf32>
    %53 = vector.extract_strided_slice %28 {offsets = [0, 88], sizes = [16, 8], strides = [1, 1]} : vector<16x96xf32> to vector<16x8xf32>
    %54 = vector.shape_cast %53 : vector<16x8xf32> to vector<2x8x8xf32>
    %55 = tpu.concatenate %48, %50, %52, %54 in 0 : vector<2x8x8xf32>, vector<2x8x8xf32>, vector<2x8x8xf32>, vector<2x8x8xf32> -> vector<8x8x8xf32>
    "tpu.trace_start"() <{level = 10 : i32, message = "nqd,nkd->nqk"}> : () -> ()
    %cst_17 = arith.constant dense<0.000000e+00> : vector<8x8x8xf32>
    %56 = tpu.matmul %37, %46, %cst_17 {dimension_numbers = #tpu.dot_dimension_numbers<[2], [2], [1], [1], [0, 0, 0, 1, 1, 1], [0], [0]>} : vector<8x8x8xf32>, vector<8x8x8xf32>, vector<8x8x8xf32> -> vector<8x8x8xf32>
    "tpu.trace_stop"() : () -> ()
    %cst_18 = arith.constant 0.353553385 : f32
    %57 = vector.broadcast %cst_18 : f32 to vector<8x8x8xf32>
    %58 = arith.mulf %56, %57 : vector<8x8x8xf32>
    %cst_19 = arith.constant 0.000000e+00 : f32
    %59 = vector.broadcast %cst_19 : f32 to vector<8x8x8xf32>
    %60 = arith.cmpf oeq, %1, %59 : vector<8x8x8xf32>
    %cst_20 = arith.constant -1.000000e+09 : f32
    %61 = vector.broadcast %cst_20 : f32 to vector<8x8x8xf32>
    %62 = arith.select %60, %61, %58 : vector<8x8x8xi1>, vector<8x8x8xf32>
    %cst_21 = arith.constant dense<0xFF800000> : vector<8x8xf32>
    %63 = vector.multi_reduction <maximumf>, %62, %cst_21 [2] : vector<8x8x8xf32> to vector<8x8xf32>
    %64 = vector.shape_cast %63 : vector<8x8xf32> to vector<8x8x1xf32>
    %65 = vector.broadcast %64 : vector<8x8x1xf32> to vector<8x8x8xf32>
    %66 = arith.subf %62, %65 : vector<8x8x8xf32>
    %67 = math.exp %66 : vector<8x8x8xf32>
    %cst_22 = arith.constant dense<0.000000e+00> : vector<8x8xf32>
    %68 = vector.multi_reduction <add>, %67, %cst_22 [2] : vector<8x8x8xf32> to vector<8x8xf32>
    %69 = vector.shape_cast %68 : vector<8x8xf32> to vector<8x8x1xf32>
    %70 = tpu.reciprocal %69 {approx = true} : vector<8x8x1xf32> -> vector<8x8x1xf32>
    %71 = vector.broadcast %70 : vector<8x8x1xf32> to vector<8x8x8xf32>
    %72 = arith.mulf %67, %71 : vector<8x8x8xf32>
    "tpu.trace_start"() <{level = 10 : i32, message = "nqk,nkd->nqd"}> : () -> ()
    %cst_23 = arith.constant dense<0.000000e+00> : vector<8x8x8xf32>
    %73 = tpu.matmul %72, %55, %cst_23 {dimension_numbers = #tpu.dot_dimension_numbers<[2], [1], [1], [2], [0, 0, 0, 1, 1, 2], [0], [0]>} : vector<8x8x8xf32>, vector<8x8x8xf32>, vector<8x8x8xf32> -> vector<8x8x8xf32>
    "tpu.trace_stop"() : () -> ()
    %74 = vector.extract_strided_slice %73 {offsets = [0, 0, 0], sizes = [2, 8, 8], strides = [1, 1, 1]} : vector<8x8x8xf32> to vector<2x8x8xf32>
    %75 = vector.extract_strided_slice %73 {offsets = [2, 0, 0], sizes = [2, 8, 8], strides = [1, 1, 1]} : vector<8x8x8xf32> to vector<2x8x8xf32>
    %76 = vector.extract_strided_slice %73 {offsets = [4, 0, 0], sizes = [2, 8, 8], strides = [1, 1, 1]} : vector<8x8x8xf32> to vector<2x8x8xf32>
    %77 = vector.extract_strided_slice %73 {offsets = [6, 0, 0], sizes = [2, 8, 8], strides = [1, 1, 1]} : vector<8x8x8xf32> to vector<2x8x8xf32>
    %78 = tpu.concatenate %74, %75, %76, %77 in 2 : vector<2x8x8xf32>, vector<2x8x8xf32>, vector<2x8x8xf32>, vector<2x8x8xf32> -> vector<2x8x32xf32>
    %79 = vector.shape_cast %78 : vector<2x8x32xf32> to vector<16x32xf32>
    %c0_24 = arith.constant 0 : index
    %c0_25 = arith.constant 0 : index
    %80 = vector.load %arg6[%c0_24, %c0_25] : memref<32x32xf32, #tpu.memory_space<vmem>>, vector<32x32xf32>
    %cst_26 = arith.constant dense<0.000000e+00> : vector<16x32xf32>
    %81 = tpu.matmul %79, %80, %cst_26 {dimension_numbers = #tpu.dot_dimension_numbers<[1], [0], [0], [1], [0, 0, 1, 1], [], []>} : vector<16x32xf32>, vector<32x32xf32>, vector<16x32xf32> -> vector<16x32xf32>
    %c0_27 = arith.constant 0 : index
    %c0_28 = arith.constant 0 : index
    %82 = vector.load %arg7[%c0_27, %c0_28] : memref<1x32xf32, #tpu.memory_space<vmem>>, vector<1x32xf32>
    %83 = vector.broadcast %82 : vector<1x32xf32> to vector<16x32xf32>
    %84 = arith.addf %81, %83 : vector<16x32xf32>
    %85 = arith.addf %0, %84 : vector<16x32xf32>
    %c0_29 = arith.constant 0 : index
    %c0_30 = arith.constant 0 : index
    %86 = vector.load %arg8[%c0_29, %c0_30] : memref<1x32xf32, #tpu.memory_space<vmem>>, vector<1x32xf32>
    %c0_31 = arith.constant 0 : index
    %c0_32 = arith.constant 0 : index
    %87 = vector.load %arg9[%c0_31, %c0_32] : memref<1x32xf32, #tpu.memory_space<vmem>>, vector<1x32xf32>
    %cst_33 = arith.constant dense<0.000000e+00> : vector<16xf32>
    %88 = vector.multi_reduction <add>, %85, %cst_33 [1] : vector<16x32xf32> to vector<16xf32>
    %89 = vector.shape_cast %88 : vector<16xf32> to vector<16x1xf32>
    %cst_34 = arith.constant 3.200000e+01 : f32
    %90 = vector.broadcast %cst_34 : f32 to vector<16x1xf32>
    %91 = arith.divf %89, %90 : vector<16x1xf32>
    %92 = vector.broadcast %91 : vector<16x1xf32> to vector<16x32xf32>
    %93 = arith.subf %85, %92 : vector<16x32xf32>
    %94 = arith.mulf %93, %93 : vector<16x32xf32>
    %cst_35 = arith.constant dense<0.000000e+00> : vector<16xf32>
    %95 = vector.multi_reduction <add>, %94, %cst_35 [1] : vector<16x32xf32> to vector<16xf32>
    %96 = vector.shape_cast %95 : vector<16xf32> to vector<16x1xf32>
    %cst_36 = arith.constant 3.100000e+01 : f32
    %97 = vector.broadcast %cst_36 : f32 to vector<16x1xf32>
    %98 = arith.divf %96, %97 : vector<16x1xf32>
    %99 = vector.broadcast %86 : vector<1x32xf32> to vector<16x32xf32>
    %100 = arith.mulf %99, %93 : vector<16x32xf32>
    %101 = math.sqrt %98 : vector<16x1xf32>
    %cst_37 = arith.constant 9.99999997E-7 : f32
    %102 = vector.broadcast %cst_37 : f32 to vector<16x1xf32>
    %103 = arith.addf %101, %102 : vector<16x1xf32>
    %104 = vector.broadcast %103 : vector<16x1xf32> to vector<16x32xf32>
    %105 = arith.divf %100, %104 : vector<16x32xf32>
    %106 = vector.broadcast %87 : vector<1x32xf32> to vector<16x32xf32>
    %107 = arith.addf %105, %106 : vector<16x32xf32>
    %c0_38 = arith.constant 0 : index
    %c0_39 = arith.constant 0 : index
    %108 = vector.load %arg10[%c0_38, %c0_39] : memref<32x64xf32, #tpu.memory_space<vmem>>, vector<32x64xf32>
    %cst_40 = arith.constant dense<0.000000e+00> : vector<16x64xf32>
    %109 = tpu.matmul %107, %108, %cst_40 {dimension_numbers = #tpu.dot_dimension_numbers<[1], [0], [0], [1], [0, 0, 1, 1], [], []>} : vector<16x32xf32>, vector<32x64xf32>, vector<16x64xf32> -> vector<16x64xf32>
    %c0_41 = arith.constant 0 : index
    %c0_42 = arith.constant 0 : index
    %110 = vector.load %arg11[%c0_41, %c0_42] : memref<1x64xf32, #tpu.memory_space<vmem>>, vector<1x64xf32>
    %111 = vector.broadcast %110 : vector<1x64xf32> to vector<16x64xf32>
    %112 = arith.addf %109, %111 : vector<16x64xf32>
    %cst_43 = arith.constant 0.000000e+00 : f32
    %113 = vector.broadcast %cst_43 : f32 to vector<16x64xf32>
    %114 = arith.maximumf %112, %113 : vector<16x64xf32>
    %c0_44 = arith.constant 0 : index
    %c0_45 = arith.constant 0 : index
    %115 = vector.load %arg12[%c0_44, %c0_45] : memref<64x32xf32, #tpu.memory_space<vmem>>, vector<64x32xf32>
    %cst_46 = arith.constant dense<0.000000e+00> : vector<16x32xf32>
    %116 = tpu.matmul %114, %115, %cst_46 {dimension_numbers = #tpu.dot_dimension_numbers<[1], [0], [0], [1], [0, 0, 1, 1], [], []>} : vector<16x64xf32>, vector<64x32xf32>, vector<16x32xf32> -> vector<16x32xf32>
    %c0_47 = arith.constant 0 : index
    %c0_48 = arith.constant 0 : index
    %117 = vector.load %arg13[%c0_47, %c0_48] : memref<1x32xf32, #tpu.memory_space<vmem>>, vector<1x32xf32>
    %118 = vector.broadcast %117 : vector<1x32xf32> to vector<16x32xf32>
    %119 = arith.addf %116, %118 : vector<16x32xf32>
    %120 = arith.addf %85, %119 : vector<16x32xf32>
    %c0_49 = arith.constant 0 : index
    %c0_50 = arith.constant 0 : index
    %121 = vector.load %arg14[%c0_49, %c0_50] : memref<16x32xf32, #tpu.memory_space<vmem>>, vector<16x32xf32>
    tpu.vector_store %arg14[%c0_49, %c0_50], %120 {strides = array<i32>} : memref<16x32xf32, #tpu.memory_space<vmem>>, vector<16x32xf32>,
    return
  }
}

</mosaic_0001>

<bundles_post_ra>
// kernel: tpu_custom_call.1
= control target key start
LH: loop header
LB: loop body
LE: loop exit
PB: predicated region body
PF: predicated region fallthrough
CT: control target
= control target key end

     0   :  { %19 = vsyncpa [#allocation3], 0  ;;  %s2868_s0 = inlined_call_operand.hbm [shape: f32[16,32], index: 0, kind: input, shape index: {}]   ;;  %s2869_s1 = inlined_call_operand.vmem [shape: f32[8,8,8], index: 1, kind: input, shape index: {}]   ;;  %s2870_s2 = inlined_call_operand.vmem [shape: f32[1,32], index: 2, kind: input, shape index: {}]   ;;  %s2871_s3 = inlined_call_operand.vmem [shape: f32[1,32], index: 3, kind: input, shape index: {}]   ;;  %s2872_s4 = inlined_call_operand.vmem [shape: f32[32,96], index: 4, kind: input, shape index: {}]   ;;  %s2873_s5 = inlined_call_operand.vmem [shape: f32[1,96], index: 5, kind: input, shape index: {}]   ;;  %s2874_s6 = inlined_call_operand.hbm [shape: f32[32,32], index: 6, kind: input, shape index: {}]   ;;  %s2875_s7 = inlined_call_operand.vmem [shape: f32[1,32], index: 7, kind: input, shape index: {}]   ;;  %s2876_s8 = inlined_call_operand.vmem [shape: f32[1,32], index: 8, kind: input, shape index: {}]   ;;  %s2877_s9 = inlined_call_operand.vmem [shape: f32[1,32], index: 9, kind: input, shape index: {}]   ;;  %s2878_s10 = inlined_call_operand.hbm [shape: f32[32,64], index: 10, kind: input, shape index: {}]   ;;  %s2879_s11 = inlined_call_operand.vmem [shape: f32[1,64], index: 11, kind: input, shape index: {}]   ;;  %s2880_s12 = inlined_call_operand.vmem [shape: f32[64,32], index: 12, kind: input, shape index: {}]   ;;  %s2881_s13 = inlined_call_operand.vmem [shape: f32[1,32], index: 13, kind: input, shape index: {}]   ;;  %s2882_s14 = inlined_call_operand.hbm [shape: f32[16,32], index: 14, kind: output, shape index: {}]  }
   0x1   :  { %20 = vsyncpa [#allocation6], 0 }
   0x2   :  { %21 = vsyncpa [#allocation4], 0  ;;  %s2421_s29 = smov [#allocation5]   ;;  %s2422_s15 = smov [#allocation2]  }
   0x3   :  { %s49_s30 = sshll.u32 %s2421_s29, 4  ;;  %s27_s16 = sshll.u32 %s2422_s15, 4  ;;  %s50_s30 = int_to_ptr.vmem [resolvable:$true] %s49_s30  ;;  %s2511_s16 = int_to_ptr.vmem [resolvable:$true] %s27_s16 }
   0x4   :  { %s2327_s19 = scalar_lea.hbm %s2874_s6, 512 }
   0x5   :  { %p2328_p0 = scmp.ne.s32.totalorder %s2874_s6, %s2327_s19  ;;  %p2331_p1 = scmp.lt.u32.totalorder %s2327_s19, %s2874_s6 }
   0x7   :  { %p2333_p2 = pnand %p2331_p1, %p2328_p0 }
   0x9   :  { %2336 = shalt.err (!%p2333_p2)
}
   0xa   :  { %s2337_s24 = scalar_lea.vmem %s50_s30, 512  ;;  %p2342_p4 = scmp.lt.s32.totalorder %s50_s30, %s50_s30 }
   0xb   :  { %p2338_p3 = scmp.ne.s32.totalorder %s50_s30, %s2337_s24  ;;  %p2343_p5 = scmp.lt.s32.totalorder %s2337_s24, %s2337_s24 }
   0xd   :  { %p2344_p6 = por %p2343_p5, %p2342_p4 }
   0xf   :  { %p2345_p7 = pnand %p2344_p6, %p2338_p3 }
  0x11   :  { %2348 = shalt.err (!%p2345_p7)
}
  0x12   :  { %s2423_s25 = smov 128   ;;  %s2424_s26 = smov 8  }
  0x13   :  { %55 = dma.hbm_to_vmem [thread:$0]  %s2874_s6, 512, %s50_s30, [#allocation6], %s2423_s25, %s2423_s25, %s2424_s26  }
  0x14   :  { %s2349_s17 = scalar_lea.hbm %s2868_s0, 256 }
  0x15   :  { %p2350_p8 = scmp.ne.s32.totalorder %s2868_s0, %s2349_s17  ;;  %p2353_p9 = scmp.lt.u32.totalorder %s2349_s17, %s2868_s0 }
  0x17   :  { %p2355_p10 = pnand %p2353_p9, %p2350_p8 }
  0x19   :  { %2358 = shalt.err (!%p2355_p10)
}
  0x1a   :  { %s2359_s22 = scalar_lea.vmem %s2511_s16, 256  ;;  %p2364_p12 = scmp.lt.s32.totalorder %s2511_s16, %s2511_s16 }
  0x1b   :  { %p2360_p11 = scmp.ne.s32.totalorder %s2511_s16, %s2359_s22  ;;  %p2365_p13 = scmp.lt.s32.totalorder %s2359_s22, %s2359_s22 }
  0x1d   :  { %p2366_p0 = por %p2365_p13, %p2364_p12 }
  0x1f   :  { %p2367_p1 = pnand %p2366_p0, %p2360_p11 }
  0x21   :  { %2370 = shalt.err (!%p2367_p1)
}
  0x22   :  { %33 = dma.hbm_to_vmem [thread:$0]  %s2868_s0, 256, %s2511_s16, [#allocation3], %s2423_s25, %s2423_s25, %s2424_s26  }
  0x23   :  { %s2425_s23 = smov [#allocation7]   ;;  %s2371_s29 = scalar_lea.hbm %s2878_s10, 512 }
  0x24   :  { %s67_s24 = sshll.u32 %s2425_s23, 4  ;;  %p2372_p2 = scmp.ne.s32.totalorder %s2878_s10, %s2371_s29  ;;  %s68_s24 = int_to_ptr.vmem [resolvable:$true] %s67_s24 }
  0x25   :  { %p2375_p3 = scmp.lt.u32.totalorder %s2371_s29, %s2878_s10 }
  0x27   :  { %p2377_p4 = pnand %p2375_p3, %p2372_p2 }
  0x29   :  { %2380 = shalt.err (!%p2377_p4)
}
  0x2a   :  { %s2381_s20 = scalar_lea.vmem %s68_s24, 512  ;;  %p2386_p6 = scmp.lt.s32.totalorder %s68_s24, %s68_s24 }
  0x2b   :  { %p2382_p5 = scmp.ne.s32.totalorder %s68_s24, %s2381_s20  ;;  %p2387_p7 = scmp.lt.s32.totalorder %s2381_s20, %s2381_s20 }
  0x2d   :  { %p2388_p8 = por %p2387_p7, %p2386_p6 }
  0x2f   :  { %p2389_p9 = pnand %p2388_p8, %p2382_p5 }
  0x31   :  { %2392 = shalt.err (!%p2389_p9)
}
  0x32   :  { %73 = dma.hbm_to_vmem [thread:$0]  %s2878_s10, 512, %s68_s24, [#allocation6], %s2423_s25, %s2423_s25, %s2424_s26  }
  0x33   :  { %2415 = dma.done.wait [#allocation3], 256  }
  0x34   :  { %2416 = vsyncadd [#allocation3], 4294967040 }
  0x35   :  { %2417 = dma.done.wait [#allocation6], 1024  }
  0x36   :  { %2418 = vsyncadd [#allocation6], 4294966272  ;;  %vm101_vm0 = vcmask 261120   ;;  %v2563_v0 = vld [vmem:[#allocation2] sm:$0xff]  ;;  %v2565_v1 = vld [vmem:[#allocation2 + $0x8] sm:$0xff]  ;;  %v2426_v47 = vmov 0.0  }
  0x37   :  { %v102_v2 = vsel %vm101_vm0, %v2563_v0, 0.0  ;;  %v105_v3 = vsel %vm101_vm0, %v2565_v1, 0.0  ;;  %v160_v14 = vld [vmem:[%s2872_s4] sm:$0xff]  ;;  %v161_v15 = vld [vmem:[%s2872_s4 + $0x8] sm:$0xff]  ;;  %v162_v16 = vld [vmem:[%s2872_s4 + $0x10] sm:$0xff]  ;;  %2113 = vmatprep.subr.mxu0 %v2426_v47  ;;  %vm2427_vm5 = vmmov 0  }
  0x38   :  { %103 = vadd.xlane.f32.xlu0 %v102_v2  ;;  %v2224_v17 = vpack.c.bf16 %v161_v15, %v160_v14  ;;  %v163_v18 = vld [vmem:[%s2872_s4 + $0x18] sm:$0xff]  ;;  %v1992_v36 = vld [vmem:[%s2870_s2] ss:$0 sm:$0xff]  ;;  %2115 = vmatprep.mubr.msk.f32.mxu0 %vm2427_vm5, %v2426_v47  ;;  %s2428_s2 = smov 120   ;;  %s2431_s19 = smov 96   ;;  %vm268_vm6 = vcmask 64512  }
  0x39   :  { %v2228_v19 = vpack.c.bf16 %v163_v18, %v162_v16  ;;  %v1993_v39 = vld [vmem:[%s2871_s3] ss:$0 sm:$0xff]  ;;  %s2429_s3 = smov 112   ;;  %v94_v16 = vld [vmem:[%s2869_s1 + $0x18] sm:$0xff]  ;;  %s2433_s18 = smov 16   ;;  %vm1621_vm15 = vcmask 130048  }
  0x3a   :  { %2225 = vmatprep.subr.bf16.mxu1 %v2224_v17  ;;  %v1994_v46 = vld [vmem:[%s2873_s5] ss:$0 sm:$0xff]  ;;  %s2430_s5 = smov 104   ;;  %vm886_vm9 = vcmp.eq.f32.partialorder %v94_v16, 0.0 }
  0x3b   :  { %2227 = vmatpush3.bf16.msra.mxu1 %v2224_v17  ;;  %v93_v17 = vld [vmem:[%s2869_s1 + $0x10] sm:$0xff] }
  0x3c   :  { %106 = vadd.xlane.f32.xlu0 %v105_v3  ;;  %2229 = vmatprep.subr.bf16.mxu1 %v2228_v19  ;;  %vm885_vm10 = vcmp.eq.f32.partialorder %v93_v17, 0.0 }
  0x3f   :  { %2231 = vmatpush3.bf16.msra.mxu1 %v2228_v19 }
  0x40   :  { %2103 = vmatprep.subr.mxu1 %v2426_v47 }
  0xc5   :  { %v104_v4 = vpop.xlane.xlu0 %103 }
  0xc6   :  { %v109_v5 = vmul.f32 0.03125, %v104_v4  ;;  %v91_v4 = vld [vmem:[%s2869_s1] sm:$0xff] }
  0xc7   :  { %vm883_vm7 = vcmp.eq.f32.partialorder %v91_v4, 0.0 }
  0xc8   :  { %v111_v6 = vsub.f32 %v2563_v0, %v109_v5 }
  0xc9   :  { %v107_v7 = vpop.xlane.xlu0 %106 }
  0xca   :  { %v110_v8 = vmul.f32 0.03125, %v107_v7  ;;  %v113_v9 = vmul.f32 %v111_v6, %v111_v6  ;;  %v130_v37 = vmul.f32 %v1992_v36, %v111_v6 }
  0xcc   :  { %v112_v10 = vsub.f32 %v2565_v1, %v110_v8  ;;  %v115_v11 = vsel %vm101_vm0, %v113_v9, 0.0 }
  0xcd   :  { %116 = vadd.xlane.f32.xlu1 %v115_v11 }
  0xce   :  { %v114_v12 = vmul.f32 %v112_v10, %v112_v10  ;;  %v131_v41 = vmul.f32 %v1992_v36, %v112_v10  ;;  %v92_v10 = vld [vmem:[%s2869_s1 + $0x8] sm:$0xff] }
  0xcf   :  { %vm884_vm8 = vcmp.eq.f32.partialorder %v92_v10, 0.0 }
  0xd0   :  { %v118_v13 = vsel %vm101_vm0, %v114_v12, 0.0 }
  0xd1   :  { %119 = vadd.xlane.f32.xlu1 %v118_v13 }
 0x15a   :  { %v117_v20 = vpop.xlane.xlu1 %116 }
 0x15b   :  { %v122_v21 = vmul.f32 0.032258064, %v117_v20 }
 0x15d   :  { %2279 = vrsqrt.f32 %v122_v21  ;;  %vm134_vm1 = vcmp.eq.f32.partialorder %v122_v21, inf  ;;  %v137_v26 = vand.u32 2147483648, %v122_v21  ;;  %vm136_vm2 = vcmp.eq.f32.partialorder %v122_v21, 0.0 }
 0x15e   :  { %v120_v22 = vpop.xlane.xlu1 %119 }
 0x15f   :  { %v123_v23 = vmul.f32 0.032258064, %v120_v22 }
 0x161   :  { %2281 = vrsqrt.f32 %v123_v23  ;;  %vm141_vm3 = vcmp.eq.f32.partialorder %v123_v23, inf  ;;  %v144_v32 = vand.u32 2147483648, %v123_v23  ;;  %vm143_vm4 = vcmp.eq.f32.partialorder %v123_v23, 0.0 }
 0x167   :  { %v2280_v24 = vpop.eup %2279 }
 0x168   :  { %v133_v25 = vmul.f32 %v2280_v24, %v122_v21 }
 0x16a   :  { %v135_v27 = vsel %vm134_vm1, %v122_v21, %v133_v25  ;;  %v95_v25 = vld [vmem:[%s2869_s1 + $0x20] sm:$0xff]  ;;  %vm1624_vm1 = vcmask 195584  }
 0x16b   :  { %v2282_v28 = vpop.eup %2281  ;;  %v138_v29 = vsel %vm136_vm2, %v137_v26, %v135_v27  ;;  %vm887_vm11 = vcmp.eq.f32.partialorder %v95_v25, 0.0 }
 0x16c   :  { %v140_v30 = vmul.f32 %v2282_v28, %v123_v23  ;;  %v146_v31 = vadd.f32 1e-06, %v138_v29  ;;  %v96_v29 = vld [vmem:[%s2869_s1 + $0x28] sm:$0xff] }
 0x16d   :  { %vm888_vm12 = vcmp.eq.f32.partialorder %v96_v29, 0.0 }
 0x16e   :  { %v142_v33 = vsel %vm141_vm3, %v123_v23, %v140_v30  ;;  %2283 = vrcp.f32 %v146_v31 }
 0x16f   :  { %v145_v34 = vsel %vm143_vm4, %v144_v32, %v142_v33  ;;  %v97_v32 = vld [vmem:[%s2869_s1 + $0x30] sm:$0xff] }
 0x170   :  { %v147_v35 = vadd.f32 1e-06, %v145_v34  ;;  %vm889_vm13 = vcmp.eq.f32.partialorder %v97_v32, 0.0 }
 0x172   :  { %2285 = vrcp.f32 %v147_v35  ;;  %v98_v35 = vld [vmem:[%s2869_s1 + $0x38] sm:$0xff]  ;;  %s2432_s1 = smov 64  }
 0x173   :  { %vm890_vm14 = vcmp.eq.f32.partialorder %v98_v35, 0.0 }
 0x178   :  { %v2284_v38 = vpop.eup %2283 }
 0x179   :  { %v149_v40 = vmul.f32 %v2284_v38, %v130_v37 }
 0x17b   :  { %v158_v42 = vadd.f32 %v1993_v39, %v149_v40 }
 0x17c   :  { %v2286_v43 = vpop.eup %2285 }
 0x17d   :  { %v151_v44 = vmul.f32 %v2286_v43, %v131_v41  ;;  %2100 = vmatprep.mubr.msk.f32.mxu1 %vm101_vm0, %v158_v42 }
 0x17f   :  { %v159_v45 = vadd.f32 %v1993_v39, %v151_v44 }
 0x181   :  { %2101 = vmatmul.mubr.msk.f32.vlgmr.msra.gmra.mrb[0].mxu1 %vm101_vm0, %v159_v45 }
 0x182   :  { %2105 = vmatprep.mubr.msk.f32.mxu1 %vm2427_vm5, %v2426_v47 }
 0x254   :  { %v2102_v48 = vpop.f32.mrb[0].mxu1 }
 0x255   :  { %v2604_v49 = vadd.f32 %v2102_v48, %v1994_v46  ;;  %v243_v50 = vpop.f32.mrb[1].mxu1 }
 0x256   :  { %v2606_v51 = vadd.f32 %v1994_v46, %v243_v50 }
 0x257   :  { %256 = vrot.lane.b32.xlu1 %v2604_v49, %s2428_s2 }
 0x258   :  { %254 = vrot.lane.b32.xlu0 %v2606_v51, %s2428_s2  ;;  %s2434_s2 = smov 24  }
 0x25b   :  { %258 = vrot.lane.b32.xlu1 %v2606_v51, %s2429_s3 }
 0x25c   :  { %262 = vrot.lane.b32.xlu0 %v2606_v51, %s2430_s5 }
 0x25f   :  { %260 = vrot.lane.b32.xlu1 %v2604_v49, %s2429_s3 }
 0x260   :  { %266 = vrot.lane.b32.xlu0 %v2606_v51, %s2431_s19 }
 0x263   :  { %264 = vrot.lane.b32.xlu1 %v2604_v49, %s2430_s5 }
 0x267   :  { %343 = vrot.lane.b32.xlu1 %v2604_v49, %s2431_s19 }
 0x2c9   :  { %v2616_v52 = vpop.permute.xlu1 %256 }
 0x2ca   :  { %495 = vrot.lane.b32.xlu1 %v2616_v52, %s2431_s19  ;;  %v2619_v53 = vpop.permute.xlu0 %254 }
 0x2cb   :  { %419 = vrot.lane.b32.xlu0 %v2619_v53, %s2431_s19 }
 0x2cd   :  { %v2622_v54 = vpop.permute.xlu1 %258 }
 0x2ce   :  { %v2624_v55 = vpop.permute.xlu0 %262 }
 0x2cf   :  { %571 = vrot.lane.b32.xlu0 %v2622_v54, %s2431_s19 }
 0x2d1   :  { %v2627_v56 = vpop.permute.xlu1 %260 }
 0x2d2   :  { %647 = vrot.lane.b32.xlu1 %v2627_v56, %s2431_s19  ;;  %v267_v57 = vpop.permute.xlu0 %266 }
 0x2d3   :  { %723 = vrot.lane.b32.xlu0 %v2624_v55, %s2431_s19  ;;  %2104 = vmatpush3.xpose.msk.msra.mxu1 %vm268_vm6, %v267_v57 }
 0x2d4   :  { %2108 = vmatprep.subr.mxu1 %v2426_v47 }
 0x2d5   :  { %v2633_v58 = vpop.permute.xlu1 %264 }
 0x2d6   :  { %799 = vrot.lane.b32.xlu1 %v2633_v58, %s2431_s19  ;;  %2106 = vmatmul.mubr.msk.f32.vlgmr.msra.gmra.mrb[2].mxu1 %vm268_vm6, %v2606_v51 }
 0x2d7   :  { %2110 = vmatprep.mubr.msk.f32.mxu1 %vm2427_vm5, %v2426_v47 }
 0x2d9   :  { %v344_v59 = vpop.permute.xlu1 %343 }
 0x2da   :  { %2109 = vmatpush3.xpose.msk.msra.mxu1 %vm268_vm6, %v344_v59 }
 0x2db   :  { %2118 = vmatprep.subr.mxu1 %v2426_v47 }
 0x2dd   :  { %2111 = vmatmul.mubr.msk.f32.vlgmr.msra.gmra.mrb[4].mxu1 %vm268_vm6, %v2604_v49 }
 0x2de   :  { %2120 = vmatprep.mubr.msk.f32.mxu1 %vm2427_vm5, %v2426_v47 }
 0x33c   :  { %v496_v60 = vpop.permute.xlu1 %495 }
 0x33d   :  { %2119 = vmatpush3.xpose.msk.msra.mxu1 %vm268_vm6, %v496_v60  ;;  %v420_v61 = vpop.permute.xlu0 %419 }
 0x33e   :  { %2114 = vmatpush3.xpose.msk.msra.mxu0 %vm268_vm6, %v420_v61  ;;  %2128 = vmatprep.subr.mxu1 %v2426_v47 }
 0x33f   :  { %2123 = vmatprep.subr.mxu0 %v2426_v47 }
 0x340   :  { %2121 = vmatmul.mubr.msk.f32.vlgmr.msra.gmra.mrb[6].mxu1 %vm268_vm6, %v2616_v52 }
 0x341   :  { %2116 = vmatmul.mubr.msk.f32.vlgmr.msra.gmra.mrb[0].mxu0 %vm268_vm6, %v2619_v53  ;;  %v572_v62 = vpop.permute.xlu0 %571  ;;  %2130 = vmatprep.mubr.msk.f32.mxu1 %vm2427_vm5, %v2426_v47 }
 0x342   :  { %2124 = vmatpush3.xpose.msk.msra.mxu0 %vm268_vm6, %v572_v62  ;;  %2125 = vmatprep.mubr.msk.f32.mxu0 %vm2427_vm5, %v2426_v47 }
 0x343   :  { %2133 = vmatprep.subr.mxu0 %v2426_v47 }
 0x344   :  { %v648_v63 = vpop.permute.xlu1 %647 }
 0x345   :  { %2126 = vmatmul.mubr.msk.f32.vlgmr.msra.gmra.mrb[2].mxu0 %vm268_vm6, %v2622_v54  ;;  %2129 = vmatpush3.xpose.msk.msra.mxu1 %vm268_vm6, %v648_v63  ;;  %v724_v2 = vpop.permute.xlu0 %723 }
 0x346   :  { %2134 = vmatpush3.xpose.msk.msra.mxu0 %vm268_vm6, %v724_v2  ;;  %2135 = vmatprep.mubr.msk.f32.mxu0 %vm2427_vm5, %v2426_v47 }
 0x347   :  { %2138 = vmatprep.subr.mxu1 %v2426_v47  ;;  %2143 = vmatprep.subr.mxu0 %v2426_v47 }
 0x348   :  { %v800_v3 = vpop.permute.xlu1 %799  ;;  %2131 = vmatmul.mubr.msk.f32.vlgmr.msra.gmra.mrb[8].mxu1 %vm268_vm6, %v2627_v56 }
 0x349   :  { %2136 = vmatmul.mubr.msk.f32.vlgmr.msra.gmra.mrb[4].mxu0 %vm268_vm6, %v2624_v55  ;;  %2139 = vmatpush3.xpose.msk.msra.mxu1 %vm268_vm6, %v800_v3 }
 0x34a   :  { %2140 = vmatprep.mubr.msk.f32.mxu1 %vm2427_vm5, %v2426_v47  ;;  %2148 = vmatprep.subr.mxu1 %v2426_v47 }
 0x34b   :  { %2145 = vmatprep.mubr.msk.f32.mxu0 %vm2427_vm5, %v2426_v47 }
 0x34c   :  { %2141 = vmatmul.mubr.msk.f32.vlgmr.msra.gmra.mrb[10].mxu1 %vm268_vm6, %v2633_v58 }
 0x34d   :  { %2150 = vmatprep.mubr.msk.f32.mxu1 %vm2427_vm5, %v2426_v47 }
 0x3a9   :  { %v339_v5 = vpop.f32.mrb[2].mxu1 }
 0x3aa   :  { %v875_v6 = vmul.f32 0.35355338, %v339_v5  ;;  %v2107_v7 = vpop.f32.mrb[3].mxu1 }
 0x3ac   :  { %v2685_v8 = vsel %vm883_vm7, -1e+09, %v875_v6 }
 0x3ad   :  { %v899_v9 = vsel %vm268_vm6, %v2685_v8, -inf }
 0x3ae   :  { %900 = vmax.xlane.f32.xlu0 %v899_v9 }
 0x3b0   :  { %v415_v11 = vpop.f32.mrb[4].mxu1 }
 0x3b1   :  { %v876_v12 = vmul.f32 0.35355338, %v415_v11  ;;  %v2112_v13 = vpop.f32.mrb[5].mxu1 }
 0x3b3   :  { %v2692_v14 = vsel %vm884_vm8, -1e+09, %v876_v12 }
 0x3b4   :  { %v902_v15 = vsel %vm268_vm6, %v2692_v14, -inf }
 0x3b5   :  { %903 = vmax.xlane.f32.xlu1 %v902_v15 }
 0x413   :  { %v567_v18 = vpop.f32.mrb[6].mxu1 }
 0x414   :  { %v878_v19 = vmul.f32 0.35355338, %v567_v18  ;;  %v491_v20 = vpop.f32.mrb[0].mxu0  ;;  %v2122_v21 = vpop.f32.mrb[7].mxu1 }
 0x415   :  { %v877_v22 = vmul.f32 0.35355338, %v491_v20  ;;  %v2117_v23 = vpop.f32.mrb[1].mxu0 }
 0x416   :  { %v894_v24 = vsel %vm886_vm9, -1e+09, %v878_v19 }
 0x417   :  { %v908_v26 = vsel %vm268_vm6, %v894_v24, -inf  ;;  %v893_v28 = vsel %vm885_vm10, -1e+09, %v877_v22 }
 0x418   :  { %909 = vmax.xlane.f32.xlu0 %v908_v26  ;;  %v643_v27 = vpop.f32.mrb[2].mxu0  ;;  %v905_v34 = vsel %vm268_vm6, %v893_v28, -inf }
 0x419   :  { %v879_v30 = vmul.f32 0.35355338, %v643_v27  ;;  %v2127_v31 = vpop.f32.mrb[3].mxu0 }
 0x41b   :  { %v719_v33 = vpop.f32.mrb[8].mxu1  ;;  %v895_v39 = vsel %vm887_vm11, -1e+09, %v879_v30 }
 0x41c   :  { %v880_v36 = vmul.f32 0.35355338, %v719_v33  ;;  %v2132_v37 = vpop.f32.mrb[9].mxu1  ;;  %906 = vmax.xlane.f32.xlu0 %v905_v34  ;;  %v795_v38 = vpop.f32.mrb[4].mxu0  ;;  %v911_v45 = vsel %vm268_vm6, %v895_v39, -inf }
 0x41d   :  { %v881_v40 = vmul.f32 0.35355338, %v795_v38  ;;  %v2137_v41 = vpop.f32.mrb[5].mxu0 }
 0x41e   :  { %v896_v42 = vsel %vm888_vm12, -1e+09, %v880_v36 }
 0x41f   :  { %v871_v43 = vpop.f32.mrb[10].mxu1  ;;  %v914_v44 = vsel %vm268_vm6, %v896_v42, -inf  ;;  %v897_v50 = vsel %vm889_vm13, -1e+09, %v881_v40 }
 0x420   :  { %v882_v46 = vmul.f32 0.35355338, %v871_v43  ;;  %915 = vmax.xlane.f32.xlu1 %v914_v44  ;;  %v2142_v48 = vpop.f32.mrb[11].mxu1  ;;  %912 = vmax.xlane.f32.xlu0 %v911_v45  ;;  %v917_v60 = vsel %vm268_vm6, %v897_v50, -inf }
 0x422   :  { %v898_v57 = vsel %vm890_vm14, -1e+09, %v882_v46 }
 0x423   :  { %v920_v59 = vsel %vm268_vm6, %v898_v57, -inf }
 0x424   :  { %921 = vmax.xlane.f32.xlu1 %v920_v59  ;;  %918 = vmax.xlane.f32.xlu0 %v917_v60 }
 0x435   :  { %1063 = vrot.lane.b32.xlu1 %v2604_v49, %s2432_s1 }
 0x439   :  { %1139 = vrot.lane.b32.xlu1 %v2619_v53, %s2432_s1 }
 0x43a   :  { %987 = vrot.lane.b32.xlu0 %v2606_v51, %s2432_s1 }
 0x43b   :  { %v901_v61 = vpop.xlane.xlu0 %900 }
 0x43c   :  { %v923_v62 = vsub.f32 %v2685_v8, %v901_v61 }
 0x43d   :  { %1215 = vrot.lane.b32.xlu1 %v2616_v52, %s2432_s1 }
 0x43e   :  { %1291 = vrot.lane.b32.xlu0 %v2622_v54, %s2432_s1  ;;  %v931_v63 = vmul.f32 1.442695, %v923_v62 }
 0x440   :  { %2287 = vpow2.f32 %v931_v63 }
 0x441   :  { %1367 = vrot.lane.b32.xlu1 %v2627_v56, %s2432_s1 }
 0x442   :  { %v904_v49 = vpop.xlane.xlu1 %903 }
 0x443   :  { %v924_v53 = vsub.f32 %v2692_v14, %v904_v49 }
 0x445   :  { %v933_v2 = vmul.f32 1.442695, %v924_v53 }
 0x447   :  { %2289 = vpow2.f32 %v933_v2 }
 0x44a   :  { %v2734_v51 = vpop.eup %2287 }
 0x44b   :  { %v947_v52 = vsel %vm268_vm6, %v2734_v51, 0.0 }
 0x451   :  { %v2738_v54 = vpop.eup %2289 }
 0x452   :  { %v950_v56 = vsel %vm268_vm6, %v2738_v54, 0.0 }
 0x45d   :  { %948 = vadd.xlane.f32.xlu0 %v947_v52 }
 0x465   :  { %951 = vadd.xlane.f32.xlu1 %v950_v56 }
 0x4a5   :  { %v910_v3 = vpop.xlane.xlu0 %909 }
 0x4a6   :  { %v926_v4 = vsub.f32 %v894_v24, %v910_v3 }
 0x4a8   :  { %v937_v5 = vmul.f32 1.442695, %v926_v4 }
 0x4a9   :  { %v907_v6 = vpop.xlane.xlu0 %906 }
 0x4aa   :  { %2291 = vpow2.f32 %v937_v5  ;;  %v925_v7 = vsub.f32 %v893_v28, %v907_v6 }
 0x4ac   :  { %v935_v8 = vmul.f32 1.442695, %v925_v7 }
 0x4ad   :  { %v916_v9 = vpop.xlane.xlu1 %915  ;;  %v913_v10 = vpop.xlane.xlu0 %912 }
 0x4ae   :  { %2293 = vpow2.f32 %v935_v8  ;;  %v928_v11 = vsub.f32 %v896_v42, %v916_v9  ;;  %v927_v12 = vsub.f32 %v895_v39, %v913_v10  ;;  %v1627_v8 = vld [vmem:[#allocation5] sm:$0xff]  ;;  %v1628_v9 = vld [vmem:[#allocation5 + $0x8] sm:$0xff] }
 0x4af   :  { %v2232_v10 = vpack.c.bf16 %v1628_v9, %v1627_v8 }
 0x4b0   :  { %v941_v13 = vmul.f32 1.442695, %v928_v11  ;;  %v939_v14 = vmul.f32 1.442695, %v927_v12  ;;  %v1629_v11 = vld [vmem:[#allocation5 + $0x10] sm:$0xff]  ;;  %v1630_v12 = vld [vmem:[#allocation5 + $0x18] sm:$0xff] }
 0x4b1   :  { %v922_v15 = vpop.xlane.xlu1 %921  ;;  %v919_v16 = vpop.xlane.xlu0 %918 }
 0x4b2   :  { %2295 = vpow2.f32 %v941_v13  ;;  %v930_v17 = vsub.f32 %v898_v57, %v922_v15  ;;  %v929_v18 = vsub.f32 %v897_v50, %v919_v16  ;;  %v2236_v13 = vpack.c.bf16 %v1630_v12, %v1629_v11 }
 0x4b3   :  { %2297 = vpow2.f32 %v939_v14 }
 0x4b4   :  { %v2292_v19 = vpop.eup %2291  ;;  %v945_v20 = vmul.f32 1.442695, %v930_v17  ;;  %v943_v21 = vmul.f32 1.442695, %v929_v18 }
 0x4b5   :  { %v1064_v22 = vpop.permute.xlu1 %1063  ;;  %v988_v23 = vpop.permute.xlu0 %987  ;;  %v956_v24 = vsel %vm268_vm6, %v2292_v19, 0.0 }
 0x4b6   :  { %2299 = vpow2.f32 %v945_v20  ;;  %2149 = vmatpush3.msra.mxu1 %v1064_v22  ;;  %957 = vadd.xlane.f32.xlu1 %v956_v24 }
 0x4b7   :  { %2301 = vpow2.f32 %v943_v21  ;;  %2144 = vmatpush3.msra.mxu0 %v988_v23  ;;  %2158 = vmatprep.subr.mxu1 %v2426_v47 }
 0x4b8   :  { %v2294_v25 = vpop.eup %2293  ;;  %2153 = vmatprep.subr.mxu0 %v2426_v47 }
 0x4b9   :  { %v953_v26 = vsel %vm268_vm6, %v2294_v25, 0.0  ;;  %v1140_v35 = vpop.permute.xlu1 %1139  ;;  %v1292_v36 = vpop.permute.xlu0 %1291 }
 0x4ba   :  { %954 = vadd.xlane.f32.xlu0 %v953_v26 }
 0x4bc   :  { %v2296_v27 = vpop.eup %2295 }
 0x4bd   :  { %v2298_v28 = vpop.eup %2297  ;;  %v962_v29 = vsel %vm268_vm6, %v2296_v27, 0.0  ;;  %v1216_v37 = vpop.permute.xlu1 %1215 }
 0x4be   :  { %963 = vadd.xlane.f32.xlu1 %v962_v29  ;;  %v959_v30 = vsel %vm268_vm6, %v2298_v28, 0.0 }
 0x4bf   :  { %960 = vadd.xlane.f32.xlu0 %v959_v30 }
 0x4c0   :  { %v2748_v31 = vpop.eup %2299 }
 0x4c1   :  { %v2750_v32 = vpop.eup %2301  ;;  %v968_v33 = vsel %vm268_vm6, %v2748_v31, 0.0  ;;  %v1368_v39 = vpop.permute.xlu1 %1367 }
 0x4c2   :  { %969 = vadd.xlane.f32.xlu1 %v968_v33  ;;  %v965_v34 = vsel %vm268_vm6, %v2750_v32, 0.0 }
 0x4c3   :  { %966 = vadd.xlane.f32.xlu0 %v965_v34 }
 0x4d3   :  { %1519 = vrot.lane.b32.xlu1 %v2633_v58, %s2432_s1 }
 0x4d9   :  { %1443 = vrot.lane.b32.xlu0 %v2624_v55, %s2432_s1 }
 0x4ea   :  { %v949_v38 = vpop.xlane.xlu0 %948 }
 0x4eb   :  { %2303 = vrcp.f32 %v949_v38 }
 0x4f2   :  { %v952_v40 = vpop.xlane.xlu1 %951 }
 0x4f3   :  { %2305 = vrcp.f32 %v952_v40 }
 0x4f5   :  { %v2304_v41 = vpop.eup %2303 }
 0x4f6   :  { %v979_v42 = vmul.f32 %v2304_v41, %v2734_v51 }
 0x4f8   :  { %2146 = vmatmul.mubr.msk.f32.vlgmr.msra.gmra.mrb[6].mxu0 %vm268_vm6, %v979_v42 }
 0x4f9   :  { %2154 = vmatpush3.msra.mxu0 %v1140_v35  ;;  %2155 = vmatprep.mubr.msk.f32.mxu0 %vm2427_vm5, %v2426_v47 }
 0x4fa   :  { %2163 = vmatprep.subr.mxu0 %v2426_v47 }
 0x4fd   :  { %v2306_v55 = vpop.eup %2305 }
 0x4fe   :  { %v980_v58 = vmul.f32 %v2306_v55, %v2738_v54 }
 0x500   :  { %2151 = vmatmul.mubr.msk.f32.vlgmr.msra.gmra.mrb[12].mxu1 %vm268_vm6, %v980_v58 }
 0x501   :  { %2159 = vmatpush3.msra.mxu1 %v1216_v37  ;;  %2160 = vmatprep.mubr.msk.f32.mxu1 %vm2427_vm5, %v2426_v47  ;;  %v2021_v37 = vld [vmem:[%s2875_s7] ss:$0 sm:$0xff] }
 0x502   :  { %2168 = vmatprep.subr.mxu1 %v2426_v47 }
 0x543   :  { %v958_v43 = vpop.xlane.xlu1 %957 }
 0x544   :  { %2307 = vrcp.f32 %v958_v43 }
 0x547   :  { %v955_v44 = vpop.xlane.xlu0 %954 }
 0x548   :  { %2309 = vrcp.f32 %v955_v44 }
 0x54b   :  { %v964_v45 = vpop.xlane.xlu1 %963 }
 0x54c   :  { %2311 = vrcp.f32 %v964_v45  ;;  %v961_v46 = vpop.xlane.xlu0 %960 }
 0x54d   :  { %2313 = vrcp.f32 %v961_v46 }
 0x54e   :  { %v2308_v48 = vpop.eup %2307 }
 0x54f   :  { %v982_v50 = vmul.f32 %v2308_v48, %v2292_v19  ;;  %v970_v57 = vpop.xlane.xlu1 %969 }
 0x550   :  { %2315 = vrcp.f32 %v970_v57  ;;  %v967_v59 = vpop.xlane.xlu0 %966 }
 0x551   :  { %2317 = vrcp.f32 %v967_v59  ;;  %2161 = vmatmul.mubr.msk.f32.vlgmr.msra.gmra.mrb[14].mxu1 %vm268_vm6, %v982_v50 }
 0x552   :  { %v2310_v60 = vpop.eup %2309  ;;  %2169 = vmatpush3.msra.mxu1 %v1368_v39  ;;  %2170 = vmatprep.mubr.msk.f32.mxu1 %vm2427_vm5, %v2426_v47 }
 0x553   :  { %v981_v61 = vmul.f32 %v2310_v60, %v2294_v25  ;;  %2178 = vmatprep.subr.mxu1 %v2426_v47  ;;  %v1520_v2 = vpop.permute.xlu1 %1519 }
 0x554   :  { %v1444_v52 = vpop.permute.xlu0 %1443 }
 0x555   :  { %2156 = vmatmul.mubr.msk.f32.vlgmr.msra.gmra.mrb[8].mxu0 %vm268_vm6, %v981_v61  ;;  %v1779_v61 = vld [vmem:[#allocation7] sm:$0xff] }
 0x556   :  { %v2312_v62 = vpop.eup %2311  ;;  %2164 = vmatpush3.msra.mxu0 %v1292_v36  ;;  %2165 = vmatprep.mubr.msk.f32.mxu0 %vm2427_vm5, %v2426_v47 }
 0x557   :  { %v2314_v63 = vpop.eup %2313  ;;  %v984_v49 = vmul.f32 %v2312_v62, %v2296_v27  ;;  %2173 = vmatprep.subr.mxu0 %v2426_v47  ;;  %v1780_v62 = vld [vmem:[#allocation7 + $0x8] sm:$0xff] }
 0x558   :  { %v983_v53 = vmul.f32 %v2314_v63, %v2298_v28  ;;  %v1781_v63 = vld [vmem:[#allocation7 + $0x10] sm:$0xff] }
 0x559   :  { %2171 = vmatmul.mubr.msk.f32.vlgmr.msra.gmra.mrb[16].mxu1 %vm268_vm6, %v984_v49  ;;  %v2240_v49 = vpack.c.bf16 %v1780_v62, %v1779_v61 }
 0x55a   :  { %v2316_v51 = vpop.eup %2315  ;;  %2166 = vmatmul.mubr.msk.f32.vlgmr.msra.gmra.mrb[10].mxu0 %vm268_vm6, %v983_v53  ;;  %2179 = vmatpush3.msra.mxu1 %v1520_v2  ;;  %v1782_v53 = vld [vmem:[#allocation7 + $0x18] sm:$0xff] }
 0x55b   :  { %v2318_v54 = vpop.eup %2317  ;;  %v986_v56 = vmul.f32 %v2316_v51, %v2748_v31  ;;  %2174 = vmatpush3.msra.mxu0 %v1444_v52  ;;  %2175 = vmatprep.mubr.msk.f32.mxu0 %vm2427_vm5, %v2426_v47  ;;  %v2244_v2 = vpack.c.bf16 %v1782_v53, %v1781_v63  ;;  %v1873_v51 = vld [vmem:[%s2880_s12] sm:$0xff]  ;;  %v1874_v52 = vld [vmem:[%s2880_s12 + $0x8] sm:$0xff] }
 0x55c   :  { %v985_v3 = vmul.f32 %v2318_v54, %v2750_v32  ;;  %2180 = vmatprep.mubr.msk.f32.mxu1 %vm2427_vm5, %v2426_v47  ;;  %2233 = vmatprep.subr.bf16.mxu0 %v2232_v10  ;;  %v1875_v54 = vld [vmem:[%s2880_s12 + $0x10] sm:$0xff] }
 0x55d   :  { %2181 = vmatmul.mubr.msk.f32.vlgmr.msra.gmra.mrb[18].mxu1 %vm268_vm6, %v986_v56  ;;  %2241 = vmatprep.subr.bf16.mxu1 %v2240_v49  ;;  %v2248_v56 = vpack.c.bf16 %v1874_v52, %v1873_v51 }
 0x55e   :  { %2176 = vmatmul.mubr.msk.f32.vlgmr.msra.gmra.mrb[12].mxu0 %vm268_vm6, %v985_v3  ;;  %2243 = vmatpush3.bf16.msra.mxu1 %v2240_v49  ;;  %v1876_v3 = vld [vmem:[%s2880_s12 + $0x18] sm:$0xff] }
 0x55f   :  { %2235 = vmatpush3.bf16.msra.mxu0 %v2232_v10  ;;  %2245 = vmatprep.subr.bf16.mxu1 %v2244_v2 }
 0x560   :  { %2237 = vmatprep.subr.bf16.mxu0 %v2236_v13 }
 0x562   :  { %2247 = vmatpush3.bf16.msra.mxu1 %v2244_v2 }
 0x563   :  { %2239 = vmatpush3.bf16.msra.mxu0 %v2236_v13 }
 0x564   :  { %2249 = vmatprep.subr.bf16.mxu0 %v2248_v56 }
 0x5cb   :  { %v1059_v4 = vpop.f32.mrb[6].mxu0 }
 0x5cc   :  { %v2147_v5 = vpop.f32.mrb[7].mxu0 }
 0x5cd   :  { %v1877_v5 = vld [vmem:[%s2880_s12 + $0x20] sm:$0xff] }
 0x5d3   :  { %v1135_v6 = vpop.f32.mrb[12].mxu1 }
 0x5d4   :  { %v2152_v7 = vpop.f32.mrb[13].mxu1 }
 0x624   :  { %v1287_v14 = vpop.f32.mrb[14].mxu1 }
 0x625   :  { %1599 = vrot.lane.b32.xlu1 %v1287_v14, %s2424_s26  ;;  %v2162_v47 = vpop.f32.mrb[15].mxu1 }
 0x628   :  { %v1211_v15 = vpop.f32.mrb[8].mxu0 }
 0x629   :  { %1597 = vrot.lane.b32.xlu0 %v1211_v15, %s2424_s26  ;;  %v2157_v16 = vpop.f32.mrb[9].mxu0 }
 0x62c   :  { %v1439_v17 = vpop.f32.mrb[16].mxu1 }
 0x62d   :  { %v1363_v18 = vpop.f32.mrb[10].mxu0  ;;  %1607 = vrot.lane.b32.xlu1 %v1439_v17, %s2433_s18  ;;  %v2172_v19 = vpop.f32.mrb[17].mxu1 }
 0x62e   :  { %1605 = vrot.lane.b32.xlu0 %v1363_v18, %s2433_s18  ;;  %v2167_v20 = vpop.f32.mrb[11].mxu0 }
 0x630   :  { %v1591_v21 = vpop.f32.mrb[18].mxu1 }
 0x631   :  { %v1515_v22 = vpop.f32.mrb[12].mxu0  ;;  %1615 = vrot.lane.b32.xlu1 %v1591_v21, %s2434_s2  ;;  %v2182_v23 = vpop.f32.mrb[19].mxu1 }
 0x632   :  { %1613 = vrot.lane.b32.xlu0 %v1515_v22, %s2434_s2  ;;  %v2177_v24 = vpop.f32.mrb[13].mxu0  ;;  %v2024_v23 = vld [vmem:[%s2876_s8] ss:$0 sm:$0xff] }
 0x697   :  { %v1600_v25 = vpop.permute.xlu1 %1599 }
 0x698   :  { %v1620_v29 = vsel %vm268_vm6, %v1135_v6, %v1600_v25  ;;  %v1878_v6 = vld [vmem:[%s2880_s12 + $0x28] sm:$0xff] }
 0x699   :  { %v2256_v7 = vpack.c.bf16 %v1878_v6, %v1877_v5 }
 0x69b   :  { %v1598_v26 = vpop.permute.xlu0 %1597 }
 0x69c   :  { %v1619_v30 = vsel %vm268_vm6, %v1059_v4, %v1598_v26  ;;  %v2252_v4 = vpack.c.bf16 %v1876_v3, %v1875_v54  ;;  %v2025_v26 = vld [vmem:[%s2877_s9] ss:$0 sm:$0xff]  ;;  %vm1888_vm6 = vcmask 523264  }
 0x69f   :  { %v1608_v27 = vpop.permute.xlu1 %1607 }
 0x6a0   :  { %v1606_v28 = vpop.permute.xlu0 %1605  ;;  %v1623_v31 = vsel %vm1621_vm15, %v1620_v29, %v1608_v27 }
 0x6a1   :  { %v1622_v33 = vsel %vm1621_vm15, %v1619_v30, %v1606_v28 }
 0x6a3   :  { %v1616_v32 = vpop.permute.xlu1 %1615 }
 0x6a4   :  { %v1626_v34 = vsel %vm1624_vm1, %v1623_v31, %v1616_v32  ;;  %v1614_v35 = vpop.permute.xlu0 %1613 }
 0x6a5   :  { %v1625_v36 = vsel %vm1624_vm1, %v1622_v33, %v1614_v35  ;;  %v1879_v33 = vld [vmem:[%s2880_s12 + $0x30] sm:$0xff] }
 0x6a6   :  { %2191 = vmatprep.mubr.msk.f32.mxu0 %vm101_vm0, %v1625_v36  ;;  %v2026_v36 = vld [vmem:[%s2879_s11] ss:$0 sm:$0xff] }
 0x6a7   :  { %2192 = vmatmul.mubr.msk.f32.vlgmr.msra.gmra.mrb[14].mxu0 %vm101_vm0, %v1626_v34  ;;  %v1880_v34 = vld [vmem:[%s2880_s12 + $0x38] sm:$0xff]  ;;  %s2435_s12 = smov [#allocation8]  }
 0x6a8   :  { %2251 = vmatpush3.bf16.msra.mxu0 %v2248_v56  ;;  %v2260_v35 = vpack.c.bf16 %v1880_v34, %v1879_v33  ;;  %s1979_s5 = sshll.u32 %s2435_s12, 4  ;;  %s1980_s5 = int_to_ptr.vmem [resolvable:$true] %s1979_s5 }
 0x6a9   :  { %2253 = vmatprep.subr.bf16.mxu0 %v2252_v4  ;;  %s2393_s11 = scalar_lea.vmem %s1980_s5, 256  ;;  %p2398_p11 = scmp.lt.s32.totalorder %s1980_s5, %s1980_s5 }
 0x6aa   :  { %p2394_p10 = scmp.ne.s32.totalorder %s1980_s5, %s2393_s11  ;;  %p2399_p12 = scmp.lt.s32.totalorder %s2393_s11, %s2393_s11 }
 0x6ac   :  { %2255 = vmatpush3.bf16.msra.mxu0 %v2252_v4  ;;  %p2400_p13 = por %p2399_p12, %p2398_p11 }
 0x6ad   :  { %2257 = vmatprep.subr.bf16.mxu0 %v2256_v7 }
 0x6ae   :  { %p2401_p0 = pnand %p2400_p13, %p2394_p10 }
 0x6b0   :  { %2259 = vmatpush3.bf16.msra.mxu0 %v2256_v7 }
 0x6b1   :  { %2261 = vmatprep.subr.bf16.mxu0 %v2260_v35 }
 0x6b4   :  { %2263 = vmatpush3.bf16.msra.mxu0 %v2260_v35 }
 0x77a   :  { %v2193_v38 = vpop.f32.mrb[14].mxu0 }
 0x77b   :  { %v1716_v39 = vadd.f32 %v2193_v38, %v2021_v37  ;;  %v1710_v40 = vpop.f32.mrb[15].mxu0 }
 0x77c   :  { %v1711_v41 = vadd.f32 %v2021_v37, %v1710_v40 }
 0x77d   :  { %v2798_v42 = vadd.f32 %v1716_v39, %v2565_v1 }
 0x77e   :  { %v2801_v55 = vadd.f32 %v1711_v41, %v2563_v0 }
 0x77f   :  { %v1726_v58 = vsel %vm101_vm0, %v2798_v42, 0.0 }
 0x780   :  { %1727 = vadd.xlane.f32.xlu1 %v1726_v58  ;;  %v1723_v43 = vsel %vm101_vm0, %v2801_v55, 0.0 }
 0x781   :  { %1724 = vadd.xlane.f32.xlu0 %v1723_v43  ;;  %v2029_v43 = vld [vmem:[%s2881_s13] ss:$0 sm:$0xff] }
 0x80d   :  { %v1728_v44 = vpop.xlane.xlu1 %1727 }
 0x80e   :  { %v1730_v45 = vmul.f32 0.03125, %v1728_v44  ;;  %v1725_v46 = vpop.xlane.xlu0 %1724 }
 0x80f   :  { %v1729_v48 = vmul.f32 0.03125, %v1725_v46 }
 0x810   :  { %v1732_v50 = vsub.f32 %v2798_v42, %v1730_v45 }
 0x811   :  { %v1731_v1 = vsub.f32 %v2801_v55, %v1729_v48 }
 0x812   :  { %v1734_v59 = vmul.f32 %v1732_v50, %v1732_v50  ;;  %v1750_v28 = vmul.f32 %v2024_v23, %v1732_v50 }
 0x813   :  { %v1733_v57 = vmul.f32 %v1731_v1, %v1731_v1  ;;  %v1749_v24 = vmul.f32 %v2024_v23, %v1731_v1 }
 0x814   :  { %v1738_v60 = vsel %vm101_vm0, %v1734_v59, 0.0 }
 0x815   :  { %v1735_v0 = vsel %vm101_vm0, %v1733_v57, 0.0 }
 0x816   :  { %1736 = vadd.xlane.f32.xlu0 %v1735_v0 }
 0x81a   :  { %1739 = vadd.xlane.f32.xlu0 %v1738_v60 }
 0x8a3   :  { %v1737_v8 = vpop.xlane.xlu0 %1736 }
 0x8a4   :  { %v1741_v9 = vmul.f32 0.032258064, %v1737_v8 }
 0x8a6   :  { %2319 = vrsqrt.f32 %v1741_v9  ;;  %vm1753_vm2 = vcmp.eq.f32.partialorder %v1741_v9, inf  ;;  %v1756_v14 = vand.u32 2147483648, %v1741_v9  ;;  %vm1755_vm3 = vcmp.eq.f32.partialorder %v1741_v9, 0.0 }
 0x8a7   :  { %v1740_v10 = vpop.xlane.xlu0 %1739 }
 0x8a8   :  { %v1742_v11 = vmul.f32 0.032258064, %v1740_v10 }
 0x8aa   :  { %2321 = vrsqrt.f32 %v1742_v11  ;;  %vm1760_vm4 = vcmp.eq.f32.partialorder %v1742_v11, inf  ;;  %v1763_v19 = vand.u32 2147483648, %v1742_v11  ;;  %vm1762_vm5 = vcmp.eq.f32.partialorder %v1742_v11, 0.0 }
 0x8b0   :  { %v2320_v12 = vpop.eup %2319 }
 0x8b1   :  { %v1752_v13 = vmul.f32 %v2320_v12, %v1741_v9 }
 0x8b3   :  { %v1754_v47 = vsel %vm1753_vm2, %v1741_v9, %v1752_v13 }
 0x8b4   :  { %v2322_v15 = vpop.eup %2321  ;;  %v1757_v16 = vsel %vm1755_vm3, %v1756_v14, %v1754_v47 }
 0x8b5   :  { %v1759_v17 = vmul.f32 %v2322_v15, %v1742_v11  ;;  %v1765_v18 = vadd.f32 1e-06, %v1757_v16 }
 0x8b7   :  { %v1761_v20 = vsel %vm1760_vm4, %v1742_v11, %v1759_v17  ;;  %2323 = vrcp.f32 %v1765_v18 }
 0x8b8   :  { %v1764_v21 = vsel %vm1762_vm5, %v1763_v19, %v1761_v20 }
 0x8b9   :  { %v1766_v22 = vadd.f32 1e-06, %v1764_v21 }
 0x8bb   :  { %2325 = vrcp.f32 %v1766_v22 }
 0x8c1   :  { %v2324_v25 = vpop.eup %2323 }
 0x8c2   :  { %v1768_v27 = vmul.f32 %v2324_v25, %v1749_v24 }
 0x8c4   :  { %v1777_v29 = vadd.f32 %v2025_v26, %v1768_v27 }
 0x8c5   :  { %v2326_v30 = vpop.eup %2325 }
 0x8c6   :  { %v1770_v31 = vmul.f32 %v2326_v30, %v1750_v28  ;;  %2202 = vmatprep.mubr.msk.f32.mxu1 %vm101_vm0, %v1777_v29 }
 0x8c8   :  { %v1778_v32 = vadd.f32 %v2025_v26, %v1770_v31 }
 0x8ca   :  { %2203 = vmatmul.mubr.msk.f32.vlgmr.msra.gmra.mrb[20].mxu1 %vm101_vm0, %v1778_v32 }
 0x99d   :  { %v2204_v37 = vpop.f32.mrb[20].mxu1 }
 0x99e   :  { %v1868_v38 = vadd.f32 %v2204_v37, %v2026_v36  ;;  %v1862_v39 = vpop.f32.mrb[21].mxu1 }
 0x99f   :  { %v1863_v40 = vadd.f32 %v2026_v36, %v1862_v39 }
 0x9a0   :  { %v1872_v58 = vmax.f32 %v1868_v38, 0.0 }
 0x9a1   :  { %v1871_v41 = vmax.f32 %v1863_v40, 0.0 }
 0x9a3   :  { %2221 = vmatprep.mubr.msk.f32.mxu0 %vm1888_vm6, %v1871_v41 }
 0x9a4   :  { %2222 = vmatmul.mubr.msk.f32.vlgmr.msra.gmra.mrb[16].mxu0 %vm1888_vm6, %v1872_v58 }
 0xa77   :  { %v2223_v44 = vpop.f32.mrb[16].mxu0 }
 0xa78   :  { %v1967_v45 = vadd.f32 %v2223_v44, %v2029_v43  ;;  %v1961_v46 = vpop.f32.mrb[17].mxu0 }
 0xa79   :  { %v1962_v48 = vadd.f32 %v2029_v43, %v1961_v46 }
 0xa7a   :  { %v1971_v50 = vadd.f32 %v1967_v45, %v2798_v42 }
 0xa7b   :  { %v1970_v1 = vadd.f32 %v1962_v48, %v2801_v55 }
 0xa7c   :  { %1973 = vst.msk [vmem:[#allocation8 + $0x8] sm:$0xff] %vm101_vm0, %v1971_v50 }
 0xa7d   :  { %1972 = vst.msk [vmem:[#allocation8] sm:$0xff] %vm101_vm0, %v1970_v1 }
 0xa7e   :  { %2404 = shalt.err (!%p2401_p0)
}
 0xa7f   :  { %s2405_s19 = scalar_lea.hbm %s2882_s14, 256 }
 0xa80   :  { %p2406_p1 = scmp.ne.s32.totalorder %s2882_s14, %s2405_s19  ;;  %p2409_p2 = scmp.lt.u32.totalorder %s2405_s19, %s2882_s14 }
 0xa82   :  { %p2411_p3 = pnand %p2409_p2, %p2406_p1 }
 0xa84   :  { %2414 = shalt.err (!%p2411_p3)
}
 0xa85   :  { %1985 = dma.vmem_to_hbm [thread:$0]  %s1980_s5, 256, %s2882_s14, [#allocation4], %s2423_s25, %s2423_s25, %s2424_s26  }
 0xa86   :  { %2419 = dma.done.wait [#allocation4], 256  }
 0xa87   :  { %2420 = vsyncadd [#allocation4], 4294967040 }
 0xa88   :  { %1989 = vsyncpa [#allocation3], 1 }
 0xa89   :  { %1990 = vsyncpa [#allocation6], 1 }
 0xa8a   :  { %1991 = vsyncpa [#allocation4], 1 }

</bundles_post_ra>
